<compile_context>
chip_gen: v5e
topology: v5e:2x2
jax: 0.10.0
libtpu: 0.0.40
codegen_flags: <defaults>
</compile_context>

<pallas_src>
import jax
import jax.numpy as jnp
from jax.experimental import pallas as pl
from jax.experimental.pallas import tpu as pltpu


def _round_up(x: int, m: int) -> int:
    return ((x + m - 1) // m) * m


# --------------------------------------------------------------- kernels ----

def ffn_kernel_resident(x_ref, w1_ref, b1_ref, w2_ref, b2_ref, o_ref):
    """Weights fully VMEM-resident: grid = (row_tiles,), no reduction axis,
    no accumulator scratch."""
    h = jnp.dot(x_ref[...], w1_ref[...], preferred_element_type=jnp.float32)
    h = jnp.maximum(h + b1_ref[...], 0.0)
    out = jnp.dot(h.astype(w2_ref.dtype), w2_ref[...],
                  preferred_element_type=jnp.float32)
    o_ref[...] = (out + b2_ref[...]).astype(o_ref.dtype)


def ffn_kernel_streamed(x_ref, w1_ref, b1_ref, w2_ref, b2_ref, o_ref, *scratch):
    """Grid = (row_tiles, hidden_tiles); axis 1 reduces over H tiles:
    acc += relu(x @ W1[:, k] + b1[k]) @ W2[k, :]; bias2 added at writeback.
    If no scratch ref is passed (f32 output) the output block is the
    accumulator itself."""
    acc_ref = scratch[0] if scratch else o_ref
    k = pl.program_id(1)

    @pl.when(k == 0)
    def _():
        acc_ref[...] = jnp.zeros_like(acc_ref)

    h = jnp.dot(x_ref[...], w1_ref[...], preferred_element_type=jnp.float32)
    h = jnp.maximum(h + b1_ref[...], 0.0)
    acc_ref[...] += jnp.dot(h.astype(w2_ref.dtype), w2_ref[...],
                            preferred_element_type=jnp.float32)

    @pl.when(k == pl.num_programs(1) - 1)
    def _():
        o_ref[...] = (acc_ref[...] + b2_ref[...]).astype(o_ref.dtype)


# ------------------------------------------------------- tile selection -----

def _tpu_generation() -> str:
    try:
        kind = jax.devices()[0].device_kind.lower()
    except Exception:
        return "unknown"
    if "v7" in kind:
        return "v7"
    if "v6" in kind:
        return "v6"
    if "v5 lite" in kind or "v5e" in kind or "v5lite" in kind:
        return "v5e"
    return "unknown"


#           physical VMEM   vmem cap (headroom)   tm     tk
_GEN_CFG = {
    "v7":      (64 * 2**20,  52 * 2**20,           384,   512),   # 64 MiB/TC
    "v6":      (128 * 2**20, 100 * 2**20,         1024,  2048),   # roofline ~656 flop/B
    "v5e":     (128 * 2**20,  96 * 2**20,          512,  1024),   # roofline ~240 flop/B
    "unknown": (64 * 2**20,   48 * 2**20,          512,   512),
}


# --------------------------------------------------------------- wrapper ----

def feed_forward(x, w1, b1, w2, b2, *, compute_dtype=jnp.bfloat16,
                 tm=None, tk=None):
    """x: (B, T, E) -> (B, T, E).  Same math as the PyTorch FeedForward module.

    compute_dtype: dtype for x / w1 / w2 on the MXU (default bf16 — native on
    v5e/v6e/v7x); accumulation and bias/ReLU stay f32.  Output keeps x.dtype.
    """
    B, T, E = x.shape
    H = w1.shape[1]
    M = B * T
    out_dtype = x.dtype

    gen = _tpu_generation()
    _, vmem_cap, tm0, tk0 = _GEN_CFG[gen]
    if tm is not None:
        tm0 = tm
    if tk is not None:
        tk0 = tk

    if compute_dtype is not None:
        x, w1, w2 = (a.astype(compute_dtype) for a in (x, w1, w2))
    b1 = b1.astype(jnp.float32)
    b2 = b2.astype(jnp.float32)

    in_isize = x.dtype.itemsize
    out_isize = jnp.dtype(out_dtype).itemsize
    # Sublane alignment: 8 rows for f32, 16 for bf16, 32 for 8-bit types.
    row_align = max(8, 32 // in_isize)

    E_pad = _round_up(E, 128)          # lane-dense loads/stores
    H_pad = _round_up(H, 128)

    # --- row tile -----------------------------------------------------------
    tm_eff = max(row_align,
                 min(_round_up(tm0, row_align), _round_up(M, row_align)))
    if gen == "v7" and M <= tm_eff and M > row_align:
        # v7x has 2 TensorCores/chip: make sure the "parallel" row axis has
        # at least 2 tiles whenever M allows it.
        tm_eff = _round_up((M + 1) // 2, row_align)
    M_pad = _round_up(M, tm_eff)
    gm = M_pad // tm_eff

    # --- VMEM estimate (double-buffered tiles + f32 intermediate + acc) ------
    def vmem_est(tm_, tk_, streamed, acc_in_out):
        x_t = tm_ * E_pad * in_isize
        w1_t = E_pad * tk_ * in_isize
        w2_t = tk_ * E_pad * in_isize
        b_t = (tk_ + E_pad) * 4                      # f32 biases
        o_t = tm_ * E_pad * out_isize
        h_t = tm_ * tk_ * 4                          # f32 (tm, tk) intermediate
        per = 2 * (x_t + w1_t + w2_t + b_t + o_t) + h_t
        if streamed and not acc_in_out:
            per += tm_ * E_pad * 4                   # f32 accumulator scratch
        return per

    acc_in_out = jnp.dtype(out_dtype) == jnp.float32

    # --- hidden tile: prefer fully VMEM-resident weights (gk == 1) -----------
    if vmem_est(tm_eff, H_pad, streamed=False, acc_in_out=True) <= vmem_cap:
        tk_eff, gk = H_pad, 1
    else:
        tk_eff = min(_round_up(tk0, 128), H_pad)
        while (vmem_est(tm_eff, tk_eff, True, acc_in_out) > vmem_cap
               and tk_eff > 128):
            tk_eff = max(128, tk_eff // 2)
        while (vmem_est(tm_eff, tk_eff, True, acc_in_out) > vmem_cap
               and tm_eff > max(row_align, 256)):
            tm_eff = max(row_align, _round_up(tm_eff // 2, row_align))
            M_pad = _round_up(M, tm_eff)
            gm = M_pad // tm_eff
        H_pad = _round_up(H_pad, tk_eff)
        gk = H_pad // tk_eff

    # --- zero-padding to TPU-friendly shapes ---------------------------------
    # NOTE: when E / H are not already 128-aligned, pre-pad the weights once
    # outside the jitted training step to avoid re-materializing padded copies
    # per call (this pad is a no-op for aligned shapes).
    x2d = jnp.pad(x.reshape(M, E), ((0, M_pad - M), (0, E_pad - E)))
    w1p = jnp.pad(w1, ((0, E_pad - E), (0, H_pad - H)))
    w2p = jnp.pad(w2, ((0, H_pad - H), (0, E_pad - E)))
    b1p = jnp.pad(b1, (0, H_pad - H)).reshape(1, H_pad)
    b2p = jnp.pad(b2, (0, E_pad - E)).reshape(1, E_pad)

    # --- scheduler hints ------------------------------------------------------
    flops = 4 * M_pad * H_pad * E_pad                # two matmuls, 2*M*H*E each
    w_reads = 1 if gk == 1 else gm                   # weights re-streamed per row tile
    bytes_accessed = int(
        x2d.size * in_isize
        + w_reads * (w1p.size + w2p.size) * in_isize
        + (b1p.size + b2p.size) * 4
        + M_pad * E_pad * out_isize)

    common = dict(
        out_shape=jax.ShapeDtypeStruct((M_pad, E_pad), out_dtype),
        compiler_params=pltpu.CompilerParams(
            dimension_semantics=(("parallel",) if gk == 1
                                 else ("parallel", "arbitrary")),
            vmem_limit_bytes=int(vmem_cap),
        ),
        cost_estimate=pl.CostEstimate(
            flops=flops, transcendentals=0, bytes_accessed=bytes_accessed),
    )

    if gk == 1:
        grid_spec = pltpu.PrefetchScalarGridSpec(
            num_scalar_prefetch=0,
            grid=(gm,),
            in_specs=[
                pl.BlockSpec((tm_eff, E_pad), lambda i: (i, 0)),    # x rows
                pl.BlockSpec((E_pad, H_pad), lambda i: (0, 0)),     # W1 (resident)
                pl.BlockSpec((1, H_pad), lambda i: (0, 0)),         # b1
                pl.BlockSpec((H_pad, E_pad), lambda i: (0, 0)),     # W2 (resident)
                pl.BlockSpec((1, E_pad), lambda i: (0, 0)),         # b2
            ],
            out_specs=pl.BlockSpec((tm_eff, E_pad), lambda i: (i, 0)),
        )
        kernel = ffn_kernel_resident
    else:
        scratch = ([] if acc_in_out
                   else [pltpu.VMEM((tm_eff, E_pad), jnp.float32)])
        grid_spec = pltpu.PrefetchScalarGridSpec(
            num_scalar_prefetch=0,
            grid=(gm, gk),
            in_specs=[
                pl.BlockSpec((tm_eff, E_pad), lambda i, k: (i, 0)),  # x rows
                pl.BlockSpec((E_pad, tk_eff), lambda i, k: (0, k)),  # W1 tile
                pl.BlockSpec((1, tk_eff), lambda i, k: (0, k)),      # b1 tile
                pl.BlockSpec((tk_eff, E_pad), lambda i, k: (k, 0)),  # W2 tile
                pl.BlockSpec((1, E_pad), lambda i, k: (0, 0)),       # b2
            ],
            out_specs=pl.BlockSpec((tm_eff, E_pad), lambda i, k: (i, 0)),
            scratch_shapes=scratch,
        )
        kernel = ffn_kernel_streamed

    out2d = pl.pallas_call(kernel, grid_spec=grid_spec, **common)(
        x2d, w1p, b1p, w2p, b2p)

    return out2d[:M, :E].reshape(B, T, E)


if __name__ == "__main__":
    # Small shapes consistent with the module: embed_size=32, hidden=4*32=128.
    B, T, E = 2, 8, 32
    H = 4 * E

    key = jax.random.PRNGKey(0)
    kx, kw1, kb1, kw2, kb2 = jax.random.split(key, 5)

    x = jax.random.normal(kx, (B, T, E), dtype=jnp.float32)
    # Deterministic parameter init (PyTorch nn.Linear-like scale).
    w1 = jax.random.uniform(kw1, (E, H), jnp.float32, -1.0, 1.0) / jnp.sqrt(E)
    b1 = jax.random.uniform(kb1, (H,), jnp.float32, -1.0, 1.0) / jnp.sqrt(E)
    w2 = jax.random.uniform(kw2, (H, E), jnp.float32, -1.0, 1.0) / jnp.sqrt(H)
    b2 = jax.random.uniform(kb2, (E,), jnp.float32, -1.0, 1.0) / jnp.sqrt(H)

    # Reference in plain JAX (same semantics as the PyTorch module).
    ref = jnp.maximum(x @ w1 + b1, 0.0) @ w2 + b2

    # Default path: bf16 compute, f32 accumulation (recommended on v5e/v6e/v7x).
    out_bf16 = jax.block_until_ready(feed_forward(x, w1, b1, w2, b2))
    assert out_bf16.shape == (B, T, E)
    assert out_bf16.dtype == x.dtype
    assert jnp.allclose(out_bf16, ref, atol=1e-1, rtol=1e-1)

    # Full-f32 path (matches PyTorch default dtype bit-for-bit class).
    out_f32 = jax.block_until_ready(
        feed_forward(x, w1, b1, w2, b2, compute_dtype=None))
    assert jnp.allclose(out_f32, ref, atol=1e-5, rtol=1e-5)

    print("KERNEL_OK")
</pallas_src>

<mosaic_0001>
module attributes {stable_mosaic.version = 11 : i64} {
  func.func @ffn_kernel_resident(%arg0: i32, %arg1: memref<16x128xbf16, #tpu.memory_space<vmem>>, %arg2: memref<128x128xbf16, #tpu.memory_space<vmem>>, %arg3: memref<1x128xf32, #tpu.memory_space<vmem>>, %arg4: memref<128x128xbf16, #tpu.memory_space<vmem>>, %arg5: memref<1x128xf32, #tpu.memory_space<vmem>>, %arg6: memref<16x128xf32, #tpu.memory_space<vmem>>) attributes {dimension_semantics = [#tpu.dimension_semantics<parallel>], iteration_bounds = array<i64: 1>, scalar_prefetch = 0 : i64, scratch_operands = 0 : i64, tpu.core_type = #tpu.core_type<tc>, window_params = [{transform_indices = @transform_0, window_bounds = array<i64: 16, 128>}, {pipeline_mode = #tpu.pipeline_mode<synchronous>, transform_indices = @transform_1, window_bounds = array<i64: 128, 128>}, {pipeline_mode = #tpu.pipeline_mode<synchronous>, transform_indices = @transform_2, window_bounds = array<i64: 1, 128>}, {pipeline_mode = #tpu.pipeline_mode<synchronous>, transform_indices = @transform_3, window_bounds = array<i64: 128, 128>}, {pipeline_mode = #tpu.pipeline_mode<synchronous>, transform_indices = @transform_4, window_bounds = array<i64: 1, 128>}, {transform_indices = @transform_5, window_bounds = array<i64: 16, 128>}]} {
    %c0 = arith.constant 0 : index
    %c0_0 = arith.constant 0 : index
    %0 = vector.load %arg1[%c0, %c0_0] : memref<16x128xbf16, #tpu.memory_space<vmem>>, vector<16x128xbf16>
    %c0_1 = arith.constant 0 : index
    %c0_2 = arith.constant 0 : index
    %1 = vector.load %arg2[%c0_1, %c0_2] : memref<128x128xbf16, #tpu.memory_space<vmem>>, vector<128x128xbf16>
    %cst = arith.constant dense<0.000000e+00> : vector<16x128xf32>
    %2 = tpu.matmul %0, %1, %cst {dimension_numbers = #tpu.dot_dimension_numbers<[1], [0], [0], [1], [0, 0, 1, 1], [], []>} : vector<16x128xbf16>, vector<128x128xbf16>, vector<16x128xf32> -> vector<16x128xf32>
    %c0_3 = arith.constant 0 : index
    %c0_4 = arith.constant 0 : index
    %3 = vector.load %arg3[%c0_3, %c0_4] : memref<1x128xf32, #tpu.memory_space<vmem>>, vector<1x128xf32>
    %4 = vector.broadcast %3 : vector<1x128xf32> to vector<16x128xf32>
    %5 = arith.addf %2, %4 : vector<16x128xf32>
    %cst_5 = arith.constant 0.000000e+00 : f32
    %6 = vector.broadcast %cst_5 : f32 to vector<16x128xf32>
    %7 = arith.maximumf %5, %6 : vector<16x128xf32>
    %8 = arith.truncf %7 : vector<16x128xf32> to vector<16x128xbf16>
    %c0_6 = arith.constant 0 : index
    %c0_7 = arith.constant 0 : index
    %9 = vector.load %arg4[%c0_6, %c0_7] : memref<128x128xbf16, #tpu.memory_space<vmem>>, vector<128x128xbf16>
    %cst_8 = arith.constant dense<0.000000e+00> : vector<16x128xf32>
    %10 = tpu.matmul %8, %9, %cst_8 {dimension_numbers = #tpu.dot_dimension_numbers<[1], [0], [0], [1], [0, 0, 1, 1], [], []>} : vector<16x128xbf16>, vector<128x128xbf16>, vector<16x128xf32> -> vector<16x128xf32>
    %c0_9 = arith.constant 0 : index
    %c0_10 = arith.constant 0 : index
    %11 = vector.load %arg5[%c0_9, %c0_10] : memref<1x128xf32, #tpu.memory_space<vmem>>, vector<1x128xf32>
    %12 = vector.broadcast %11 : vector<1x128xf32> to vector<16x128xf32>
    %13 = arith.addf %10, %12 : vector<16x128xf32>
    %c0_11 = arith.constant 0 : index
    %c0_12 = arith.constant 0 : index
    %14 = vector.load %arg6[%c0_11, %c0_12] : memref<16x128xf32, #tpu.memory_space<vmem>>, vector<16x128xf32>
    tpu.vector_store %arg6[%c0_11, %c0_12], %13 {strides = array<i32>} : memref<16x128xf32, #tpu.memory_space<vmem>>, vector<16x128xf32>,
    return
  }
  func.func @transform_0(%arg0: i32) -> (i32, i32) {
    %c0_i32 = arith.constant 0 : i32
    %c0_i32_0 = arith.constant 0 : i32
    return %arg0, %c0_i32 : i32, i32
  }
  func.func @transform_1(%arg0: i32) -> (i32, i32) {
    %c0_i32 = arith.constant 0 : i32
    %c0_i32_0 = arith.constant 0 : i32
    %c0_i32_1 = arith.constant 0 : i32
    return %c0_i32, %c0_i32_0 : i32, i32
  }
  func.func @transform_2(%arg0: i32) -> (i32, i32) {
    %c0_i32 = arith.constant 0 : i32
    %c0_i32_0 = arith.constant 0 : i32
    %c0_i32_1 = arith.constant 0 : i32
    return %c0_i32, %c0_i32_0 : i32, i32
  }
  func.func @transform_3(%arg0: i32) -> (i32, i32) {
    %c0_i32 = arith.constant 0 : i32
    %c0_i32_0 = arith.constant 0 : i32
    %c0_i32_1 = arith.constant 0 : i32
    return %c0_i32, %c0_i32_0 : i32, i32
  }
  func.func @transform_4(%arg0: i32) -> (i32, i32) {
    %c0_i32 = arith.constant 0 : i32
    %c0_i32_0 = arith.constant 0 : i32
    %c0_i32_1 = arith.constant 0 : i32
    return %c0_i32, %c0_i32_0 : i32, i32
  }
  func.func @transform_5(%arg0: i32) -> (i32, i32) {
    %c0_i32 = arith.constant 0 : i32
    %c0_i32_0 = arith.constant 0 : i32
    return %arg0, %c0_i32 : i32, i32
  }
}

</mosaic_0001>

<bundles_post_ra>
// kernel: tpu_custom_call.1
= control target key start
LH: loop header
LB: loop body
LE: loop exit
PB: predicated region body
PF: predicated region fallthrough
CT: control target
= control target key end

     0   :  { %10 = vsyncpa [#allocation3], 0  ;;  %s518_s0 = inlined_call_operand.hbm [shape: bf16[16,128], index: 0, kind: input, shape index: {}]   ;;  %s519_s1 = inlined_call_operand.hbm [shape: bf16[128,128], index: 1, kind: input, shape index: {}]   ;;  %s520_s2 = inlined_call_operand.vmem [shape: f32[1,128], index: 2, kind: input, shape index: {}]   ;;  %s521_s3 = inlined_call_operand.hbm [shape: bf16[128,128], index: 3, kind: input, shape index: {}]   ;;  %s522_s4 = inlined_call_operand.vmem [shape: f32[1,128], index: 4, kind: input, shape index: {}]   ;;  %s523_s5 = inlined_call_operand.hbm [shape: f32[16,128], index: 5, kind: output, shape index: {}]  }
   0x1   :  { %11 = vsyncpa [#allocation6], 0 }
   0x2   :  { %12 = vsyncpa [#allocation4], 0  ;;  %s30_s20 = sshll.u32 %s519_s1, 4  ;;  %s462_s21 = smov [#allocation5]   ;;  %s31_s20 = int_to_ptr.hbm [resolvable:$true] %s30_s20 }
   0x3   :  { %s32_s22 = sshll.u32 %s462_s21, 4  ;;  %s17_s25 = sshll.u32 %s518_s0, 4  ;;  %s33_s22 = int_to_ptr.vmem [resolvable:$true] %s32_s22  ;;  %s18_s25 = int_to_ptr.hbm [resolvable:$true] %s17_s25 }
   0x4   :  { %s463_s26 = smov 64   ;;  %s464_s27 = smov 4  }
   0x5   :  { %38 = dma.hbm_to_vmem [thread:$0]  %s31_s20, 1024, %s33_s22, [#allocation6], %s463_s26, %s463_s26, %s464_s27  }
   0x6   :  { %s465_s28 = smov [#allocation2]   ;;  %s45_s7 = sshll.u32 %s521_s3, 4  ;;  %s46_s7 = int_to_ptr.hbm [resolvable:$true] %s45_s7 }
   0x7   :  { %s19_s29 = sshll.u32 %s465_s28, 4  ;;  %s466_s1 = smov [#allocation7]   ;;  %s20_s29 = int_to_ptr.vmem [resolvable:$true] %s19_s29 }
   0x8   :  { %25 = dma.hbm_to_vmem [thread:$0]  %s18_s25, 128, %s20_s29, [#allocation3], %s463_s26, %s463_s26, %s464_s27  }
   0x9   :  { %s47_s8 = sshll.u32 %s466_s1, 4  ;;  %s48_s8 = int_to_ptr.vmem [resolvable:$true] %s47_s8 }
   0xa   :  { %53 = dma.hbm_to_vmem [thread:$0]  %s46_s7, 1024, %s48_s8, [#allocation6], %s463_s26, %s463_s26, %s464_s27  }
   0xb   :  { %456 = dma.done.wait [#allocation3], 128  }
   0xc   :  { %457 = vsyncadd [#allocation3], 4294967168 }
   0xd   :  { %458 = dma.done.wait [#allocation6], 2048  }
   0xe   :  { %459 = vsyncadd [#allocation6], 4294965248  ;;  %v341_v0 = vld [vmem:[#allocation5 + $0x38] sm:$0xff]  ;;  %v340_v1 = vld [vmem:[#allocation5 + $0x30] sm:$0xff]  ;;  %s467_s11 = smov [#allocation8]   ;;  %s468_s15 = smov 128  }
   0xf   :  { %144 = vmatpush.bf16.msra.mxu0 %v341_v0  ;;  %v349_v2 = vld [vmem:[#allocation7 + $0x38] sm:$0xff]  ;;  %v348_v3 = vld [vmem:[#allocation7 + $0x30] sm:$0xff]  ;;  %v339_v4 = vld [vmem:[#allocation5 + $0x28] sm:$0xff]  ;;  %s249_s12 = sshll.u32 %s467_s11, 4  ;;  %s469_s16 = smov 8   ;;  %s250_s12 = int_to_ptr.vmem [resolvable:$true] %s249_s12 }
  0x10   :  { %229 = vmatpush.bf16.msra.mxu1 %v349_v2  ;;  %v347_v5 = vld [vmem:[#allocation7 + $0x28] sm:$0xff]  ;;  %v338_v6 = vld [vmem:[#allocation5 + $0x20] sm:$0xff]  ;;  %v337_v8 = vld [vmem:[#allocation5 + $0x18] sm:$0xff] }
  0x11   :  { %v346_v7 = vld [vmem:[#allocation7 + $0x20] sm:$0xff]  ;;  %v336_v9 = vld [vmem:[#allocation5 + $0x10] sm:$0xff]  ;;  %v335_v10 = vld [vmem:[#allocation5 + $0x8] sm:$0xff] }
  0x12   :  { %v334_v11 = vld [vmem:[#allocation5] sm:$0xff]  ;;  %v333_v12 = vld [vmem:[#allocation2] sm:$0xff]  ;;  %v344_v14 = vld [vmem:[#allocation7 + $0x10] sm:$0xff] }
  0x13   :  { %145 = vmatpush.bf16.msra.mxu0 %v340_v1  ;;  %v345_v13 = vld [vmem:[#allocation7 + $0x18] sm:$0xff]  ;;  %v343_v15 = vld [vmem:[#allocation7 + $0x8] sm:$0xff]  ;;  %v342_v16 = vld [vmem:[#allocation7] sm:$0xff] }
  0x14   :  { %230 = vmatpush.bf16.msra.mxu1 %v348_v3  ;;  %v358_v18 = vld [vmem:[%s520_s2] ss:$0 sm:$0xff]  ;;  %s251_s2 = sshll.u32 %s523_s5, 4  ;;  %s252_s2 = int_to_ptr.hbm [resolvable:$true] %s251_s2 }
  0x15   :  { %v359_v25 = vld [vmem:[%s522_s4] ss:$0 sm:$0xff] }
  0x17   :  { %146 = vmatpush.bf16.msra.mxu0 %v339_v4 }
  0x18   :  { %231 = vmatpush.bf16.msra.mxu1 %v347_v5 }
  0x1b   :  { %147 = vmatpush.bf16.msra.mxu0 %v338_v6 }
  0x1c   :  { %232 = vmatpush.bf16.msra.mxu1 %v346_v7 }
  0x1f   :  { %148 = vmatpush.bf16.msra.mxu0 %v337_v8 }
  0x20   :  { %233 = vmatpush.bf16.msra.mxu1 %v345_v13 }
  0x23   :  { %149 = vmatpush.bf16.msra.mxu0 %v336_v9 }
  0x24   :  { %234 = vmatpush.bf16.msra.mxu1 %v344_v14 }
  0x27   :  { %150 = vmatpush.bf16.msra.mxu0 %v335_v10 }
  0x28   :  { %235 = vmatpush.bf16.msra.mxu1 %v343_v15 }
  0x2b   :  { %151 = vmatpush.bf16.msra.mxu0 %v334_v11 }
  0x2c   :  { %236 = vmatpush.bf16.msra.mxu1 %v342_v16 }
  0x2e   :  { %152 = vmatmul.bf16.vlgmr.msra.gmra.mxu0 %v333_v12 }
  0xab   :  { %v153_v17 = vpop.f32.mrf.mxu0 }
  0xac   :  { %v154_v19 = vadd.f32 %v358_v18, %v153_v17 }
  0xae   :  { %v158_v22 = vmax.f32 %v154_v19, 0.0 }
  0xb3   :  { %v155_v20 = vpop.f32.mrf.mxu0 }
  0xb4   :  { %v156_v21 = vadd.f32 %v358_v18, %v155_v20 }
  0xb6   :  { %v159_v23 = vmax.f32 %v156_v21, 0.0 }
  0xb8   :  { %v160_v24 = vpack.c.bf16 %v159_v23, %v158_v22 }
  0xba   :  { %237 = vmatmul.bf16.vlgmr.msra.gmra.mxu1 %v160_v24 }
 0x137   :  { %v238_v26 = vpop.f32.mrf.mxu1 }
 0x138   :  { %v239_v27 = vadd.f32 %v359_v25, %v238_v26 }
 0x13a   :  { %243 = vst [vmem:[#allocation8] sm:$0xff] %v239_v27 }
 0x13f   :  { %v240_v28 = vpop.f32.mrf.mxu1 }
 0x140   :  { %v241_v29 = vadd.f32 %v359_v25, %v240_v28 }
 0x142   :  { %244 = vst [vmem:[#allocation8 + $0x8] sm:$0xff] %v241_v29 }
 0x143   :  { %257 = dma.vmem_to_hbm [thread:$0]  %s250_s12, 256, %s252_s2, [#allocation4], %s468_s15, %s468_s15, %s469_s16  }
 0x144   :  { %460 = dma.done.wait [#allocation4], 256  }
 0x145   :  { %461 = vsyncadd [#allocation4], 4294967040 }
 0x146   :  { %262 = vsyncpa [#allocation3], 1 }
 0x147   :  { %263 = vsyncpa [#allocation6], 1 }
 0x148   :  { %264 = vsyncpa [#allocation4], 1 }

</bundles_post_ra>
